<compile_context>
chip_gen: v7x
topology: tpu7x:2x2x1
jax: 0.10.0
libtpu: 0.0.40
codegen_flags: <defaults>
</compile_context>

<pallas_src>
import jax
import jax.numpy as jnp
from jax.experimental import pallas as pl
from jax.experimental.pallas import tpu as pltpu  # noqa: F401  (kept for TODO above)
import numpy as np


def birec_kernel(xy_ref,                 # (2*N, C)  rows [0:N)=x, [N:2N)=y
                 we_ref, be_ref,         # embedding  (C, D), (1, D)
                 wenc_ref, benc_ref,     # encoder    (D, D), (1, D)
                 wd_ref, bd_ref,         # decoder    (D, C), (1, C)
                 wm_ref, bm_ref,         # mapper     (C, C), (1, C)
                 yhat_ref,               # (N, C)
                 loss_ref):              # (2, N): row 0 = predloss, row 1 = recloss
    xy = xy_ref[...]                                   # (2N, C)
    n = xy_ref.shape[0] // 2                           # static

    # Fused embedding -> encoder(ReLU) -> decoder over both x and y rows at once.
    emb = jnp.dot(xy, we_ref[...], preferred_element_type=jnp.float32) + be_ref[...]
    enc = jnp.maximum(
        jnp.dot(emb, wenc_ref[...], preferred_element_type=jnp.float32) + benc_ref[...],
        0.0)
    dec = jnp.dot(enc, wd_ref[...], preferred_element_type=jnp.float32) + bd_ref[...]

    x_in, y_in = xy[:n], xy[n:]                        # (N, C) each
    x_dec, y_dec = dec[:n], dec[n:]                    # (N, C) each

    # mapper
    y_hat = jnp.dot(x_dec, wm_ref[...], preferred_element_type=jnp.float32) + bm_ref[...]
    yhat_ref[...] = y_hat.astype(yhat_ref.dtype)

    pred = jnp.mean((y_hat - y_dec) ** 2, axis=-1)                     # (N,)
    rec = (jnp.mean(jnp.abs(x_dec - x_in), axis=-1)
           + jnp.mean(jnp.abs(y_dec - y_in), axis=-1))                 # (N,)

    # Single packed loss store (one output DMA instead of three).
    loss_ref[...] = jnp.concatenate([pred[None, :], rec[None, :]], axis=0)


def birec_forward(x, y, x_mark, y_mark, params):
    # x_mark / y_mark unused, kept for parity with the PyTorch forward signature.
    del x_mark, y_mark
    B, L, C = x.shape
    D = params["w_emb"].shape[1]
    N = B * L

    # Fold (B, L) into the sublane/row axis and stack x over y: one (2N, C) tile.
    xy = jnp.concatenate([x.reshape(N, C), y.reshape(N, C)], axis=0)

    w_emb, b_emb = params["w_emb"], params["b_emb"].reshape(1, D)
    w_enc, b_enc = params["w_enc"], params["b_enc"].reshape(1, D)
    w_dec, b_dec = params["w_dec"], params["b_dec"].reshape(1, C)
    w_map, b_map = params["w_map"], params["b_map"].reshape(1, C)

    out_shapes = (
        jax.ShapeDtypeStruct((N, C), jnp.float32),   # y_hat (flat rows)
        jax.ShapeDtypeStruct((2, N), jnp.float32),   # packed [predloss; recloss]
    )

    # Single kernel invocation: no grid, whole arrays resident in VMEM.
    y_hat_flat, losses = pl.pallas_call(
        birec_kernel,
        out_shape=out_shapes,
    )(xy, w_emb, b_emb, w_enc, b_enc, w_dec, b_dec, w_map, b_map)

    y_hat = y_hat_flat.reshape(B, L, C)
    predloss = losses[0].reshape(B, L)
    recloss = losses[1].reshape(B, L)
    normloss = jnp.zeros_like(predloss)   # constant zeros: produced here, not in-kernel

    return {"y_hat": y_hat, "predloss": predloss,
            "normloss": normloss, "recloss": recloss}


def reference_forward(x, y, params):
    # pure-JAX reference for validation
    def enc_dec(v):
        emb = v @ params["w_emb"] + params["b_emb"]
        enc = jax.nn.relu(emb @ params["w_enc"] + params["b_enc"])
        return enc @ params["w_dec"] + params["b_dec"]
    x_dec = enc_dec(x)
    y_dec = enc_dec(y)
    y_hat = x_dec @ params["w_map"] + params["b_map"]
    pred = jnp.mean((y_hat - y_dec) ** 2, axis=-1)
    rec = jnp.mean(jnp.abs(x_dec - x), axis=-1) + jnp.mean(jnp.abs(y_dec - y), axis=-1)
    return {"y_hat": y_hat, "predloss": pred,
            "normloss": jnp.zeros_like(pred), "recloss": rec}


if __name__ == "__main__":
    B, L, C, D = 2, 8, 4, 32

    key = jax.random.PRNGKey(0)
    keys = jax.random.split(key, 12)
    x = jax.random.normal(keys[0], (B, L, C), jnp.float32)
    y = jax.random.normal(keys[1], (B, L, C), jnp.float32)
    x_mark = jax.random.normal(keys[2], (B, L, C), jnp.float32)   # unused
    y_mark = jax.random.normal(keys[3], (B, L, C), jnp.float32)   # unused

    params = {
        "w_emb": 0.1 * jax.random.normal(keys[4], (C, D), jnp.float32),
        "b_emb": 0.1 * jax.random.normal(keys[5], (D,), jnp.float32),
        "w_enc": 0.1 * jax.random.normal(keys[6], (D, D), jnp.float32),
        "b_enc": 0.1 * jax.random.normal(keys[7], (D,), jnp.float32),
        "w_dec": 0.1 * jax.random.normal(keys[8], (D, C), jnp.float32),
        "b_dec": 0.1 * jax.random.normal(keys[9], (C,), jnp.float32),
        "w_map": 0.1 * jax.random.normal(keys[10], (C, C), jnp.float32),
        "b_map": 0.1 * jax.random.normal(keys[11], (C,), jnp.float32),
    }

    out = birec_forward(x, y, x_mark, y_mark, params)
    jax.block_until_ready(out)

    ref = reference_forward(x, y, params)
    for k in ("y_hat", "predloss", "normloss", "recloss"):
        np.testing.assert_allclose(np.asarray(out[k]), np.asarray(ref[k]),
                                   rtol=1e-5, atol=1e-5)

    print("KERNEL_OK")
</pallas_src>

<mosaic_0001>
module attributes {stable_mosaic.version = 11 : i64} {
  func.func @birec_kernel(%arg0: memref<32x4xf32, #tpu.memory_space<vmem>>, %arg1: memref<4x32xf32, #tpu.memory_space<vmem>>, %arg2: memref<1x32xf32, #tpu.memory_space<vmem>>, %arg3: memref<32x32xf32, #tpu.memory_space<vmem>>, %arg4: memref<1x32xf32, #tpu.memory_space<vmem>>, %arg5: memref<32x4xf32, #tpu.memory_space<vmem>>, %arg6: memref<1x4xf32, #tpu.memory_space<vmem>>, %arg7: memref<4x4xf32, #tpu.memory_space<vmem>>, %arg8: memref<1x4xf32, #tpu.memory_space<vmem>>, %arg9: memref<16x4xf32, #tpu.memory_space<vmem>>, %arg10: memref<2x16xf32, #tpu.memory_space<vmem>>) attributes {dimension_semantics = [], scalar_prefetch = 0 : i64, scratch_operands = 0 : i64, tpu.core_type = #tpu.core_type<tc>} {
    %c0 = arith.constant 0 : index
    %c0_0 = arith.constant 0 : index
    %0 = vector.load %arg0[%c0, %c0_0] : memref<32x4xf32, #tpu.memory_space<vmem>>, vector<32x4xf32>
    %c0_1 = arith.constant 0 : index
    %c0_2 = arith.constant 0 : index
    %1 = vector.load %arg1[%c0_1, %c0_2] : memref<4x32xf32, #tpu.memory_space<vmem>>, vector<4x32xf32>
    %cst = arith.constant dense<0.000000e+00> : vector<32x32xf32>
    %2 = tpu.matmul %0, %1, %cst {dimension_numbers = #tpu.dot_dimension_numbers<[1], [0], [0], [1], [0, 0, 1, 1], [], []>} : vector<32x4xf32>, vector<4x32xf32>, vector<32x32xf32> -> vector<32x32xf32>
    %c0_3 = arith.constant 0 : index
    %c0_4 = arith.constant 0 : index
    %3 = vector.load %arg2[%c0_3, %c0_4] : memref<1x32xf32, #tpu.memory_space<vmem>>, vector<1x32xf32>
    %4 = vector.broadcast %3 : vector<1x32xf32> to vector<32x32xf32>
    %5 = arith.addf %2, %4 : vector<32x32xf32>
    %c0_5 = arith.constant 0 : index
    %c0_6 = arith.constant 0 : index
    %6 = vector.load %arg3[%c0_5, %c0_6] : memref<32x32xf32, #tpu.memory_space<vmem>>, vector<32x32xf32>
    %cst_7 = arith.constant dense<0.000000e+00> : vector<32x32xf32>
    %7 = tpu.matmul %5, %6, %cst_7 {dimension_numbers = #tpu.dot_dimension_numbers<[1], [0], [0], [1], [0, 0, 1, 1], [], []>} : vector<32x32xf32>, vector<32x32xf32>, vector<32x32xf32> -> vector<32x32xf32>
    %c0_8 = arith.constant 0 : index
    %c0_9 = arith.constant 0 : index
    %8 = vector.load %arg4[%c0_8, %c0_9] : memref<1x32xf32, #tpu.memory_space<vmem>>, vector<1x32xf32>
    %9 = vector.broadcast %8 : vector<1x32xf32> to vector<32x32xf32>
    %10 = arith.addf %7, %9 : vector<32x32xf32>
    %cst_10 = arith.constant 0.000000e+00 : f32
    %11 = vector.broadcast %cst_10 : f32 to vector<32x32xf32>
    %12 = arith.maximumf %10, %11 : vector<32x32xf32>
    %c0_11 = arith.constant 0 : index
    %c0_12 = arith.constant 0 : index
    %13 = vector.load %arg5[%c0_11, %c0_12] : memref<32x4xf32, #tpu.memory_space<vmem>>, vector<32x4xf32>
    %cst_13 = arith.constant dense<0.000000e+00> : vector<32x4xf32>
    %14 = tpu.matmul %12, %13, %cst_13 {dimension_numbers = #tpu.dot_dimension_numbers<[1], [0], [0], [1], [0, 0, 1, 1], [], []>} : vector<32x32xf32>, vector<32x4xf32>, vector<32x4xf32> -> vector<32x4xf32>
    %c0_14 = arith.constant 0 : index
    %c0_15 = arith.constant 0 : index
    %15 = vector.load %arg6[%c0_14, %c0_15] : memref<1x4xf32, #tpu.memory_space<vmem>>, vector<1x4xf32>
    %16 = vector.broadcast %15 : vector<1x4xf32> to vector<32x4xf32>
    %17 = arith.addf %14, %16 : vector<32x4xf32>
    %18 = vector.extract_strided_slice %0 {offsets = [0, 0], sizes = [16, 4], strides = [1, 1]} : vector<32x4xf32> to vector<16x4xf32>
    %19 = vector.extract_strided_slice %0 {offsets = [16, 0], sizes = [16, 4], strides = [1, 1]} : vector<32x4xf32> to vector<16x4xf32>
    %20 = vector.extract_strided_slice %17 {offsets = [0, 0], sizes = [16, 4], strides = [1, 1]} : vector<32x4xf32> to vector<16x4xf32>
    %21 = vector.extract_strided_slice %17 {offsets = [16, 0], sizes = [16, 4], strides = [1, 1]} : vector<32x4xf32> to vector<16x4xf32>
    %c0_16 = arith.constant 0 : index
    %c0_17 = arith.constant 0 : index
    %22 = vector.load %arg7[%c0_16, %c0_17] : memref<4x4xf32, #tpu.memory_space<vmem>>, vector<4x4xf32>
    %cst_18 = arith.constant dense<0.000000e+00> : vector<16x4xf32>
    %23 = tpu.matmul %20, %22, %cst_18 {dimension_numbers = #tpu.dot_dimension_numbers<[1], [0], [0], [1], [0, 0, 1, 1], [], []>} : vector<16x4xf32>, vector<4x4xf32>, vector<16x4xf32> -> vector<16x4xf32>
    %c0_19 = arith.constant 0 : index
    %c0_20 = arith.constant 0 : index
    %24 = vector.load %arg8[%c0_19, %c0_20] : memref<1x4xf32, #tpu.memory_space<vmem>>, vector<1x4xf32>
    %25 = vector.broadcast %24 : vector<1x4xf32> to vector<16x4xf32>
    %26 = arith.addf %23, %25 : vector<16x4xf32>
    %c0_21 = arith.constant 0 : index
    %c0_22 = arith.constant 0 : index
    %27 = vector.load %arg9[%c0_21, %c0_22] : memref<16x4xf32, #tpu.memory_space<vmem>>, vector<16x4xf32>
    tpu.vector_store %arg9[%c0_21, %c0_22], %26 {strides = array<i32>} : memref<16x4xf32, #tpu.memory_space<vmem>>, vector<16x4xf32>,
    %28 = arith.subf %26, %21 : vector<16x4xf32>
    %29 = arith.mulf %28, %28 : vector<16x4xf32>
    %cst_23 = arith.constant dense<0.000000e+00> : vector<16xf32>
    %30 = vector.multi_reduction <add>, %29, %cst_23 [1] : vector<16x4xf32> to vector<16xf32>
    %cst_24 = arith.constant 4.000000e+00 : f32
    %31 = vector.broadcast %cst_24 : f32 to vector<16xf32>
    %32 = arith.divf %30, %31 : vector<16xf32>
    %33 = arith.subf %20, %18 : vector<16x4xf32>
    %34 = math.absf %33 : vector<16x4xf32>
    %cst_25 = arith.constant dense<0.000000e+00> : vector<16xf32>
    %35 = vector.multi_reduction <add>, %34, %cst_25 [1] : vector<16x4xf32> to vector<16xf32>
    %cst_26 = arith.constant 4.000000e+00 : f32
    %36 = vector.broadcast %cst_26 : f32 to vector<16xf32>
    %37 = arith.divf %35, %36 : vector<16xf32>
    %38 = arith.subf %21, %19 : vector<16x4xf32>
    %39 = math.absf %38 : vector<16x4xf32>
    %cst_27 = arith.constant dense<0.000000e+00> : vector<16xf32>
    %40 = vector.multi_reduction <add>, %39, %cst_27 [1] : vector<16x4xf32> to vector<16xf32>
    %cst_28 = arith.constant 4.000000e+00 : f32
    %41 = vector.broadcast %cst_28 : f32 to vector<16xf32>
    %42 = arith.divf %40, %41 : vector<16xf32>
    %43 = arith.addf %37, %42 : vector<16xf32>
    %44 = vector.shape_cast %32 : vector<16xf32> to vector<1x16xf32>
    %45 = vector.shape_cast %43 : vector<16xf32> to vector<1x16xf32>
    %46 = tpu.concatenate %44, %45 in 0 : vector<1x16xf32>, vector<1x16xf32> -> vector<2x16xf32>
    %c0_29 = arith.constant 0 : index
    %c0_30 = arith.constant 0 : index
    %47 = vector.load %arg10[%c0_29, %c0_30] : memref<2x16xf32, #tpu.memory_space<vmem>>, vector<2x16xf32>
    tpu.vector_store %arg10[%c0_29, %c0_30], %46 {strides = array<i32>} : memref<2x16xf32, #tpu.memory_space<vmem>>, vector<2x16xf32>,
    return
  }
}

</mosaic_0001>

<bundles_post_ra>
// kernel: tpu_custom_call.1
= control target key start
LH: loop header
LB: loop body
LE: loop exit
PB: predicated region body
PF: predicated region fallthrough
CT: control target
= control target key end

     0   :  { %vm60_vm0 = vcmask 1043456   ;;  %vm47_vm1 = vcmask 31744   ;;  %s849_s0 = inlined_call_operand.vmem [shape: f32[32,4], index: 0, kind: input, shape index: {}]   ;;  %s850_s1 = inlined_call_operand.vmem [shape: f32[4,32], index: 1, kind: input, shape index: {}]   ;;  %s851_s2 = inlined_call_operand.vmem [shape: f32[1,32], index: 2, kind: input, shape index: {}]   ;;  %s852_s3 = inlined_call_operand.vmem [shape: f32[32,32], index: 3, kind: input, shape index: {}]   ;;  %s853_s4 = inlined_call_operand.vmem [shape: f32[1,32], index: 4, kind: input, shape index: {}]   ;;  %s854_s5 = inlined_call_operand.vmem [shape: f32[32,4], index: 5, kind: input, shape index: {}]   ;;  %s855_s6 = inlined_call_operand.vmem [shape: f32[1,4], index: 6, kind: input, shape index: {}]   ;;  %s856_s7 = inlined_call_operand.vmem [shape: f32[4,4], index: 7, kind: input, shape index: {}]   ;;  %s857_s8 = inlined_call_operand.vmem [shape: f32[1,4], index: 8, kind: input, shape index: {}]   ;;  %s858_s9 = inlined_call_operand.vmem [shape: f32[16,4], index: 9, kind: output, shape index: {0}]   ;;  %s859_s10 = inlined_call_operand.hbm [shape: f32[2,16], index: 10, kind: output, shape index: {1}]  }
   0x1   :  { %v39_v0 = vld [vmem:[%s850_s1] sm:$0xf]  ;;  %v746_v2 = vld [vmem:[%s849_s0 + $0x8] sm:$0xff]  ;;  %v754_v3 = vld [vmem:[%s849_s0 + $0x10] sm:$0xff] }
   0x2   :  { %v741_v1 = vld [vmem:[%s849_s0] sm:$0xff]  ;;  %597 = vmatprep.subr.msk.mxu0 %vm60_vm0, %v39_v0  ;;  %v150_v5 = vld [vmem:[%s852_s3 + $0x8] sm:$0xff] }
   0x3   :  { %599 = vmatprep.mubr.msk.f32.mxu0 %vm47_vm1, %v741_v1  ;;  %v149_v4 = vld [vmem:[%s852_s3] sm:$0xff]  ;;  %598 = vmatpush3.msk.msra.mxu0 %vm60_vm0, %v39_v0 }
   0x4   :  { %16 = vsyncpa [#allocation3], 0  ;;  %600 = vmatmul.mubr.msk.f32.vlgmr.msra.gmra.mrb[0].mxu0 %vm47_vm1, %v746_v2  ;;  %v638_v6 = vpack.c.bf16 %v150_v5, %v149_v4  ;;  %v770_v7 = vld [vmem:[%s849_s0 + $0x18] sm:$0xff]  ;;  %v151_v8 = vld [vmem:[%s852_s3 + $0x10] sm:$0xff]  ;;  %vm160_vm2 = vcmask 261120   ;;  %vm516_vm3 = vcmask 130112  }
   0x5   :  { %602 = vmatprep.mubr.msk.f32.mxu0 %vm47_vm1, %v754_v3  ;;  %v152_v9 = vld [vmem:[%s852_s3 + $0x18] sm:$0xff]  ;;  %v262_v11 = vld [vmem:[%s854_s5] sm:$0xff]  ;;  %v263_v12 = vld [vmem:[%s854_s5 + $0x8] sm:$0xff]  ;;  %vm531_vm4 = vcmask 1040384   ;;  %vm533_vm5 = vcmask 123904  }
   0x6   :  { %639 = vmatprep.subr.bf16.mxu1 %v638_v6  ;;  %v642_v10 = vpack.c.bf16 %v152_v9, %v151_v8  ;;  %v646_v13 = vpack.c.bf16 %v263_v12, %v262_v11  ;;  %v553_v14 = vld [vmem:[%s851_s2] ss:$0 sm:$0xff]  ;;  %v264_v23 = vld [vmem:[%s854_s5 + $0x10] sm:$0xff]  ;;  %v265_v24 = vld [vmem:[%s854_s5 + $0x18] sm:$0xff] }
   0x7   :  { %641 = vmatpush3.bf16.msra.mxu1 %v638_v6  ;;  %v650_v25 = vpack.c.bf16 %v265_v24, %v264_v23  ;;  %v370_v26 = vld [vmem:[%s856_s7] sm:$0xf] }
   0x8   :  { %603 = vmatmul.mubr.msk.f32.gmra.mrb[2].mxu0 %vm47_vm1, %v770_v7  ;;  %643 = vmatprep.subr.bf16.mxu1 %v642_v10  ;;  %v559_v27 = vld [vmem:[%s853_s4] ss:$0 sm:$0xff] }
   0x9   :  { %647 = vmatprep.subr.bf16.mxu0 %v646_v13  ;;  %v564_v40 = vld [vmem:[%s855_s6] ss:$0 sm:$0xff] }
   0xa   :  { %649 = vmatpush3.bf16.msra.mxu0 %v646_v13  ;;  %v569_v61 = vld [vmem:[%s857_s8] ss:$0 sm:$0xff]  ;;  %s679_s8 = smov [#allocation2]  }
   0xb   :  { %645 = vmatpush3.bf16.msra.mxu1 %v642_v10  ;;  %651 = vmatprep.subr.bf16.mxu0 %v650_v25  ;;  %v505_v10 = vlaneseq }
   0xc   :  { %633 = vmatprep.subr.msk.mxu1 %vm60_vm0, %v370_v26 }
   0xd   :  { %v506_v12 = vand.u32 127, %v505_v10 }
   0xe   :  { %653 = vmatpush3.bf16.msra.mxu0 %v650_v25 }
  0xd7   :  { %v601_v15 = vpop.f32.mrb[0].mxu0 }
  0xd8   :  { %v130_v16 = vpop.f32.mrb[1].mxu0  ;;  %v136_v18 = vadd.f32 %v601_v15, %v553_v14 }
  0xd9   :  { %v131_v17 = vadd.f32 %v553_v14, %v130_v16 }
  0xdb   :  { %v604_v19 = vpop.f32.mrb[2].mxu0  ;;  %613 = vmatprep.mubr.msk.f32.mxu1 %vm160_vm2, %v131_v17  ;;  %v508_v17 = vshrl.u32 %v505_v10, 7 }
  0xdc   :  { %v146_v20 = vadd.f32 %v604_v19, %v553_v14  ;;  %v140_v21 = vpop.f32.mrb[3].mxu0  ;;  %614 = vmatmul.mubr.msk.f32.vlgmr.msra.gmra.mrb[0].mxu1 %vm160_vm2, %v136_v18  ;;  %v511_v18 = vadd.s32 4294967288, %v506_v12 }
  0xdd   :  { %v141_v22 = vadd.f32 %v553_v14, %v140_v21  ;;  %634 = vmatpush3.msk.msra.mxu1 %vm60_vm0, %v370_v26  ;;  %v509_v21 = vsub.s32 %v506_v12, %v508_v17 }
  0xde   :  { %v514_v23 = vsub.s32 %v511_v18, %v508_v17 }
  0xdf   :  { %616 = vmatprep.mubr.msk.f32.mxu1 %vm160_vm2, %v141_v22 }
  0xe0   :  { %617 = vmatmul.mubr.msk.f32.gmra.mrb[2].mxu1 %vm160_vm2, %v146_v20 }
 0x1af   :  { %v615_v28 = vpop.f32.mrb[0].mxu1 }
 0x1b0   :  { %v245_v29 = vadd.f32 %v615_v28, %v559_v27  ;;  %v239_v30 = vpop.f32.mrb[1].mxu1 }
 0x1b1   :  { %v240_v31 = vadd.f32 %v559_v27, %v239_v30 }
 0x1b2   :  { %v259_v34 = vmax.f32 %v245_v29, 0.0 }
 0x1b3   :  { %v258_v32 = vmax.f32 %v240_v31, 0.0  ;;  %v618_v33 = vpop.f32.mrb[2].mxu1 }
 0x1b4   :  { %v255_v35 = vadd.f32 %v618_v33, %v559_v27  ;;  %v249_v36 = vpop.f32.mrb[3].mxu1 }
 0x1b5   :  { %v250_v37 = vadd.f32 %v559_v27, %v249_v36  ;;  %627 = vmatprep.mubr.msk.f32.mxu0 %vm160_vm2, %v258_v32 }
 0x1b6   :  { %v261_v38 = vmax.f32 %v255_v35, 0.0  ;;  %628 = vmatmul.mubr.msk.f32.vlgmr.msra.gmra.mrb[4].mxu0 %vm160_vm2, %v259_v34 }
 0x1b7   :  { %v260_v39 = vmax.f32 %v250_v37, 0.0 }
 0x1b9   :  { %630 = vmatprep.mubr.msk.f32.mxu0 %vm160_vm2, %v260_v39 }
 0x1ba   :  { %631 = vmatmul.mubr.msk.f32.gmra.mrb[6].mxu0 %vm160_vm2, %v261_v38 }
 0x289   :  { %v629_v41 = vpop.f32.mrb[4].mxu0 }
 0x28a   :  { %v357_v42 = vadd.f32 %v629_v41, %v564_v40  ;;  %v351_v43 = vpop.f32.mrb[5].mxu0 }
 0x28b   :  { %v352_v44 = vadd.f32 %v564_v40, %v351_v43 }
 0x28c   :  { %v478_v45 = vsub.f32 %v357_v42, %v746_v2 }
 0x28d   :  { %v477_v46 = vsub.f32 %v352_v44, %v741_v1  ;;  %v632_v47 = vpop.f32.mrb[6].mxu0  ;;  %635 = vmatprep.mubr.msk.f32.mxu1 %vm47_vm1, %v352_v44 }
 0x28e   :  { %v367_v48 = vadd.f32 %v632_v47, %v564_v40  ;;  %636 = vmatmul.mubr.msk.f32.vlgmr.msra.gmra.mrb[4].mxu1 %vm47_vm1, %v357_v42  ;;  %v480_v49 = vand.u32 2147483647, %v478_v45  ;;  %v361_v50 = vpop.f32.mrb[7].mxu0 }
 0x28f   :  { %v362_v51 = vadd.f32 %v564_v40, %v361_v50  ;;  %v479_v54 = vand.u32 2147483647, %v477_v46 }
 0x290   :  { %v484_v52 = vsel %vm47_vm1, %v480_v49, 0.0  ;;  %v490_v53 = vsub.f32 %v367_v48, %v770_v7 }
 0x291   :  { %485 = vadd.xlane.f32.xlu0 %v484_v52  ;;  %v489_v55 = vsub.f32 %v362_v51, %v754_v3  ;;  %v481_v59 = vsel %vm47_vm1, %v479_v54, 0.0 }
 0x292   :  { %v492_v56 = vand.u32 2147483647, %v490_v53 }
 0x293   :  { %v491_v57 = vand.u32 2147483647, %v489_v55 }
 0x294   :  { %v496_v58 = vsel %vm47_vm1, %v492_v56, 0.0 }
 0x295   :  { %497 = vadd.xlane.f32.xlu1 %v496_v58  ;;  %482 = vadd.xlane.f32.xlu0 %v481_v59  ;;  %v493_v60 = vsel %vm47_vm1, %v491_v57, 0.0 }
 0x299   :  { %494 = vadd.xlane.f32.xlu1 %v493_v60 }
 0x31e   :  { %v486_v9 = vpop.xlane.xlu0 %485 }
 0x31f   :  { %v488_v19 = vmul.f32 0.25, %v486_v9 }
 0x322   :  { %v498_v8 = vpop.xlane.xlu1 %497  ;;  %v483_v13 = vpop.xlane.xlu0 %482 }
 0x323   :  { %v500_v15 = vmul.f32 0.25, %v498_v8  ;;  %v487_v16 = vmul.f32 0.25, %v483_v13 }
 0x325   :  { %v502_v22 = vadd.f32 %v500_v15, %v488_v19 }
 0x326   :  { %v495_v11 = vpop.xlane.xlu1 %494 }
 0x327   :  { %v499_v14 = vmul.f32 0.25, %v495_v11  ;;  %v528_v30 = vrot.slane %v502_v22, %v514_v23 }
 0x329   :  { %v501_v20 = vadd.f32 %v499_v14, %v487_v16 }
 0x32b   :  { %v524_v27 = vrot.slane %v501_v20, %v509_v21 }
 0x32d   :  { %v529_v33 = vsel %vm516_vm3, %v528_v30, %v524_v27 }
 0x361   :  { %v637_v62 = vpop.f32.mrb[4].mxu1 }
 0x362   :  { %v459_v63 = vadd.f32 %v637_v62, %v569_v61  ;;  %v453_v0 = vpop.f32.mrb[5].mxu1 }
 0x363   :  { %v454_v1 = vadd.f32 %v569_v61, %v453_v0 }
 0x364   :  { %463 = vst.msk [vmem:[%s858_s9 + $0x8] sm:$0xff] %vm47_vm1, %v459_v63  ;;  %v465_v2 = vsub.f32 %v459_v63, %v367_v48 }
 0x365   :  { %462 = vst.msk [vmem:[%s858_s9] sm:$0xff] %vm47_vm1, %v454_v1  ;;  %v464_v3 = vsub.f32 %v454_v1, %v362_v51  ;;  %s543_s9 = sshll.u32 %s679_s8, 4  ;;  %s544_s9 = int_to_ptr.vmem [resolvable:$true] %s543_s9 }
 0x366   :  { %v467_v4 = vmul.f32 %v465_v2, %v465_v2  ;;  %s655_s24 = scalar_lea.vmem %s544_s9, 32  ;;  %p660_p1 = scmp.lt.s32.totalorder %s544_s9, %s544_s9 }
 0x367   :  { %v466_v5 = vmul.f32 %v464_v3, %v464_v3  ;;  %p656_p0 = scmp.ne.s32.totalorder %s544_s9, %s655_s24  ;;  %p661_p2 = scmp.lt.s32.totalorder %s655_s24, %s655_s24 }
 0x368   :  { %v471_v6 = vsel %vm47_vm1, %v467_v4, 0.0 }
 0x369   :  { %472 = vadd.xlane.f32.xlu1 %v471_v6  ;;  %v468_v7 = vsel %vm47_vm1, %v466_v5, 0.0  ;;  %p662_p3 = por %p661_p2, %p660_p1 }
 0x36a   :  { %469 = vadd.xlane.f32.xlu0 %v468_v7 }
 0x36b   :  { %p663_p4 = pnand %p662_p3, %p656_p0 }
 0x3f6   :  { %v473_v24 = vpop.xlane.xlu1 %472 }
 0x3f7   :  { %v476_v25 = vmul.f32 0.25, %v473_v24  ;;  %v470_v26 = vpop.xlane.xlu0 %469 }
 0x3f8   :  { %v475_v28 = vmul.f32 0.25, %v470_v26 }
 0x3f9   :  { %v515_v29 = vrot.slane %v476_v25, %v514_v23 }
 0x3fa   :  { %v510_v31 = vrot.slane %v475_v28, %v509_v21 }
 0x3fc   :  { %v517_v32 = vsel %vm516_vm3, %v515_v29, %v510_v31 }
 0x3fd   :  { %v532_v34 = vsel %vm531_vm4, %v517_v32, %v529_v33 }
 0x3fe   :  { %534 = vst.msk [vmem:[#allocation2] sm:$0x3] %vm533_vm5, %v532_v34 }
 0x3ff   :  { %666 = shalt.err (!%p663_p4)
}
 0x400   :  { %s667_s27 = scalar_lea.hbm %s859_s10, 32 }
 0x401   :  { %p668_p5 = scmp.ne.s32.totalorder %s859_s10, %s667_s27  ;;  %p671_p6 = scmp.lt.u32.totalorder %s667_s27, %s859_s10 }
 0x403   :  { %p673_p7 = pnand %p671_p6, %p668_p5 }
 0x405   :  { %676 = shalt.err (!%p673_p7)
}
 0x406   :  { %546 = dma.vmem_to_hbm [thread:$0]  %s544_s9, 32, %s859_s10, [#allocation3]  }
 0x407   :  { %677 = dma.done.wait [#allocation3], 32  }
 0x408   :  { %678 = vsyncadd [#allocation3], 4294967264 }
 0x409   :  { %552 = vsyncpa [#allocation3], 1 }

</bundles_post_ra>
